<compile_context>
chip_gen: v6e
topology: v6e:2x2x1
jax: 0.10.0
libtpu: 0.0.40
codegen_flags: <defaults>
</compile_context>

<pallas_src>
import jax
import jax.numpy as jnp
from jax.experimental import pallas as pl
from jax.experimental.pallas import tpu as pltpu


def _round_up(x, m):
    return ((x + m - 1) // m) * m


# --------------------------------------------------------------------------- kernel

def _cond_gen_kernel(z_ref, c_ref, w1_ref, b1_ref, w2_ref, b2_ref, o_ref, h_buf):
    """Fused 2-layer MLP tile: concat -> Linear -> LeakyReLU(0.2) -> Linear -> ReLU."""

    # Layer 1 depends only on the batch (i) tile: compute it once per i, on the
    # first N-tile, and cache the activation in VMEM scratch for the remaining j.
    @pl.when(pl.program_id(1) == 0)
    def _():
        x = jnp.concatenate([z_ref[...], c_ref[...]], axis=1)      # (TM, Z+C), lane concat
        x = x.astype(w1_ref.dtype)                                 # MXU dtype (bf16/f32)
        h = jnp.dot(x, w1_ref[...], preferred_element_type=jnp.float32)
        h = h + b1_ref[...]                                        # broadcast (1, gh_pad)
        h = jnp.maximum(h, 0.2 * h)                                # LeakyReLU(0.2)
        h_buf[...] = h.astype(h_buf.dtype)

    y = jnp.dot(h_buf[...], w2_ref[...], preferred_element_type=jnp.float32)
    y = y + b2_ref[...]                                            # broadcast (1, TN)
    o_ref[...] = jnp.maximum(y, 0.0).astype(o_ref.dtype)           # ReLU


# --------------------------------------------------------------- parameter preparation

def prepare_params(w1, b1, w2, b2, *, param_dtype=jnp.bfloat16):
    """One-time weight prep (hoisted out of the per-call forward).

    w1: (Z_dim + C_dim, gh_dim)   b1: (gh_dim,)
    w2: (gh_dim, X_dim)           b2: (X_dim,)

    Zero-pads gh_dim and X_dim to multiples of 128 (lane-dense hidden activation and
    output stores; padding contributes exactly 0) and casts weights to `param_dtype`
    (bf16 by default for the bf16-native MXUs). Biases stay f32.
    """
    d_in, gh_dim = w1.shape
    gh2, x_dim = w2.shape
    assert gh2 == gh_dim, "w1/w2 hidden dims mismatch"
    assert b1.shape == (gh_dim,) and b2.shape == (x_dim,)

    gh_pad = _round_up(gh_dim, 128)
    x_pad = _round_up(max(x_dim, 128), 128)

    if gh_pad != gh_dim:
        p = gh_pad - gh_dim
        w1 = jnp.pad(w1, ((0, 0), (0, p)))
        b1 = jnp.pad(b1, (0, p))
        w2 = jnp.pad(w2, ((0, p), (0, 0)))
    if x_pad != x_dim:
        p = x_pad - x_dim
        w2 = jnp.pad(w2, ((0, 0), (0, p)))
        b2 = jnp.pad(b2, (0, p))

    return {
        "w1": jnp.asarray(w1, param_dtype),
        "b1": jnp.asarray(b1, jnp.float32).reshape(1, gh_pad),
        "w2": jnp.asarray(w2, param_dtype),
        "b2": jnp.asarray(b2, jnp.float32).reshape(1, x_pad),
        "d_in": int(d_in),
        "gh_pad": int(gh_pad),
        "x_dim": int(x_dim),
        "x_pad": int(x_pad),
    }


# ------------------------------------------------------------------------ tile sizing

def _select_tiles(B, zc_dim, gh_pad, x_pad, param_itemsize, out_itemsize,
                  tm_max, vmem_budget_bytes):
    """Pick (TM, TN) so the working set fits the VMEM budget and the parallel
    batch axis has at least 2 grid steps (v7x megacore)."""
    # N tile: keep each (double-buffered) W2 slice <= ~4 MiB; multiple of 128.
    tn = x_pad
    while tn > 128 and gh_pad * tn * param_itemsize > (4 << 20):
        tn = max(128, _round_up(tn // 2, 128))

    # M tile: multiple of 8, no larger than needed, and >= 2 steps when B > 8.
    tm = min(tm_max, max(8, _round_up(-(-B // 2), 8)), _round_up(B, 8))

    def vmem_bytes(tm_, tn_):
        return (2 * tm_ * zc_dim * 4                                   # z,c tiles (dbl-buf)
                + 2 * (zc_dim * gh_pad * param_itemsize + gh_pad * 4)  # W1, b1
                + 2 * (gh_pad * tn_ * param_itemsize + tn_ * 4)        # W2 slice, b2
                + 2 * tm_ * tn_ * out_itemsize                         # out tile (dbl-buf)
                + tm_ * gh_pad * (param_itemsize + 4))                 # h scratch + f32 temp

    while tm > 8 and vmem_bytes(tm, tn) > vmem_budget_bytes:
        tm = max(8, _round_up(tm // 2, 8))
    return tm, tn


# ---------------------------------------------------------------------------- forward

def conditional_generator_forward(c, z, params, *, tm=1024,
                                  out_dtype=jnp.float32,
                                  vmem_budget_bytes=24 << 20):
    """Pallas forward pass.

    c: (B, C_dim) float   z: (B, Z_dim) float   params: from prepare_params().
    Returns (B, X_dim) in `out_dtype` (f32 by default; bf16 halves output HBM traffic).
    """
    B, c_dim = c.shape
    bz, z_dim = z.shape
    assert bz == B and z_dim + c_dim == params["d_in"]

    w1, b1, w2, b2 = params["w1"], params["b1"], params["w2"], params["b2"]
    gh_pad, x_dim, x_pad = params["gh_pad"], params["x_dim"], params["x_pad"]

    param_itemsize = jnp.dtype(w1.dtype).itemsize
    out_itemsize = jnp.dtype(out_dtype).itemsize
    TM, TN = _select_tiles(B, z_dim + c_dim, gh_pad, x_pad,
                           param_itemsize, out_itemsize, tm, vmem_budget_bytes)

    grid = (pl.cdiv(B, TM), pl.cdiv(x_pad, TN))

    out = pl.pallas_call(
        _cond_gen_kernel,
        out_shape=jax.ShapeDtypeStruct((B, x_pad), out_dtype),
        grid=grid,
        in_specs=[
            pl.BlockSpec((TM, z_dim), lambda i, j: (i, 0)),            # z tile
            pl.BlockSpec((TM, c_dim), lambda i, j: (i, 0)),            # c tile
            pl.BlockSpec((z_dim + c_dim, gh_pad), lambda i, j: (0, 0)),  # W1 (resident)
            pl.BlockSpec((1, gh_pad), lambda i, j: (0, 0)),            # b1
            pl.BlockSpec((gh_pad, TN), lambda i, j: (0, j)),           # W2 slice
            pl.BlockSpec((1, TN), lambda i, j: (0, j)),                # b2 slice
        ],
        out_specs=pl.BlockSpec((TM, TN), lambda i, j: (i, j)),
        scratch_shapes=[pltpu.VMEM((TM, gh_pad), w1.dtype)],           # cached layer-1 act
        compiler_params=pltpu.CompilerParams(
            dimension_semantics=("parallel", "arbitrary")),
    )(z, c, w1, b1, w2, b2)

    if x_pad != x_dim:
        # Only taken when X_dim is not lane-aligned; padding keeps the in-kernel
        # stores lane-dense at the cost of this one trim.
        out = out[:, :x_dim]
    return out


# --------------------------------------------------------------------------- reference

def _reference(c, z, w1, b1, w2, b2):
    x = jnp.concatenate([z, c], axis=1)
    h = x @ w1 + b1
    h = jnp.where(h > 0, h, 0.2 * h)
    y = h @ w2 + b2
    return jnp.maximum(y, 0.0)


if __name__ == "__main__":
    # Small opt-like dims consistent with the module.
    C_dim, Z_dim, gh_dim, X_dim = 16, 16, 64, 128
    B = 64

    key = jax.random.PRNGKey(0)
    kc, kz, kw1, kb1, kw2, kb2 = jax.random.split(key, 6)

    c = jax.random.normal(kc, (B, C_dim), dtype=jnp.float32)
    z = jax.random.normal(kz, (B, Z_dim), dtype=jnp.float32)

    # Deterministic synthetic parameter init (nn.Linear-style uniform fan-in scaling),
    # stored (in_features, out_features).
    lim1 = 1.0 / jnp.sqrt(C_dim + Z_dim)
    lim2 = 1.0 / jnp.sqrt(gh_dim)
    w1 = jax.random.uniform(kw1, (C_dim + Z_dim, gh_dim), jnp.float32, -lim1, lim1)
    b1 = jax.random.uniform(kb1, (gh_dim,), jnp.float32, -lim1, lim1)
    w2 = jax.random.uniform(kw2, (gh_dim, X_dim), jnp.float32, -lim2, lim2)
    b2 = jax.random.uniform(kb2, (X_dim,), jnp.float32, -lim2, lim2)

    ref = _reference(c, z, w1, b1, w2, b2)

    # 1) f32 weight path (tight tolerance). B=64 -> TM=32 -> 2 parallel grid steps.
    params_f32 = prepare_params(w1, b1, w2, b2, param_dtype=jnp.float32)
    out = conditional_generator_forward(c, z, params_f32)
    out = jax.block_until_ready(out)
    assert out.shape == (B, X_dim)
    assert jnp.allclose(out, ref, atol=1e-5, rtol=1e-5), "f32 path mismatch vs reference"

    # 2) Ragged batch (B=50, TM=32): last tile masked by Pallas, no wrapper pad/slice.
    Br = 50
    out_r = conditional_generator_forward(c[:Br], z[:Br], params_f32)
    out_r = jax.block_until_ready(out_r)
    assert out_r.shape == (Br, X_dim)
    assert jnp.allclose(out_r, ref[:Br], atol=1e-5, rtol=1e-5), "ragged batch mismatch"

    # 3) Default bf16-weight path (MXU-native on v5e/v6e/v7x); looser tolerance.
    params_bf16 = prepare_params(w1, b1, w2, b2)   # param_dtype=bf16 by default
    out_bf16 = conditional_generator_forward(c, z, params_bf16)
    out_bf16 = jax.block_until_ready(out_bf16)
    assert jnp.allclose(out_bf16, ref, atol=5e-2, rtol=5e-2), "bf16 path mismatch"

    print("KERNEL_OK")
</pallas_src>

<mosaic_0001>
module attributes {stable_mosaic.version = 11 : i64} {
  func.func @_cond_gen_kernel(%arg0: i32, %arg1: i32, %arg2: memref<32x16xf32, #tpu.memory_space<vmem>>, %arg3: memref<32x16xf32, #tpu.memory_space<vmem>>, %arg4: memref<32x128xf32, #tpu.memory_space<vmem>>, %arg5: memref<1x128xf32, #tpu.memory_space<vmem>>, %arg6: memref<128x128xf32, #tpu.memory_space<vmem>>, %arg7: memref<1x128xf32, #tpu.memory_space<vmem>>, %arg8: memref<32x128xf32, #tpu.memory_space<vmem>>, %arg9: memref<32x128xf32, #tpu.memory_space<vmem>>) attributes {dimension_semantics = [#tpu.dimension_semantics<parallel>, #tpu.dimension_semantics<arbitrary>], iteration_bounds = array<i64: 2, 1>, scalar_prefetch = 0 : i64, scratch_operands = 1 : i64, tpu.core_type = #tpu.core_type<tc>, window_params = [{transform_indices = @transform_0, window_bounds = array<i64: 32, 16>}, {transform_indices = @transform_1, window_bounds = array<i64: 32, 16>}, {pipeline_mode = #tpu.pipeline_mode<synchronous>, transform_indices = @transform_2, window_bounds = array<i64: 32, 128>}, {pipeline_mode = #tpu.pipeline_mode<synchronous>, transform_indices = @transform_3, window_bounds = array<i64: 1, 128>}, {transform_indices = @transform_4, window_bounds = array<i64: 128, 128>}, {transform_indices = @transform_5, window_bounds = array<i64: 1, 128>}, {transform_indices = @transform_6, window_bounds = array<i64: 32, 128>}]} {
    %c0_i32 = arith.constant 0 : i32
    %0 = arith.cmpi eq, %arg1, %c0_i32 : i32
    %1 = arith.extui %0 : i1 to i32
    %c0_i32_0 = arith.constant 0 : i32
    %2 = arith.cmpi ne, %1, %c0_i32_0 : i32
    scf.if %2 {
      %c0_9 = arith.constant 0 : index
      %c0_10 = arith.constant 0 : index
      %12 = vector.load %arg2[%c0_9, %c0_10] : memref<32x16xf32, #tpu.memory_space<vmem>>, vector<32x16xf32>
      %c0_11 = arith.constant 0 : index
      %c0_12 = arith.constant 0 : index
      %13 = vector.load %arg3[%c0_11, %c0_12] : memref<32x16xf32, #tpu.memory_space<vmem>>, vector<32x16xf32>
      %14 = tpu.concatenate %12, %13 in 1 : vector<32x16xf32>, vector<32x16xf32> -> vector<32x32xf32>
      %c0_13 = arith.constant 0 : index
      %c0_14 = arith.constant 0 : index
      %15 = vector.load %arg4[%c0_13, %c0_14] : memref<32x128xf32, #tpu.memory_space<vmem>>, vector<32x128xf32>
      %cst_15 = arith.constant dense<0.000000e+00> : vector<32x128xf32>
      %16 = tpu.matmul %14, %15, %cst_15 {dimension_numbers = #tpu.dot_dimension_numbers<[1], [0], [0], [1], [0, 0, 1, 1], [], []>} : vector<32x32xf32>, vector<32x128xf32>, vector<32x128xf32> -> vector<32x128xf32>
      %c0_16 = arith.constant 0 : index
      %c0_17 = arith.constant 0 : index
      %17 = vector.load %arg5[%c0_16, %c0_17] : memref<1x128xf32, #tpu.memory_space<vmem>>, vector<1x128xf32>
      %18 = vector.broadcast %17 : vector<1x128xf32> to vector<32x128xf32>
      %19 = arith.addf %16, %18 : vector<32x128xf32>
      %cst_18 = arith.constant 2.000000e-01 : f32
      %20 = vector.broadcast %cst_18 : f32 to vector<32x128xf32>
      %21 = arith.mulf %20, %19 : vector<32x128xf32>
      %22 = arith.maximumf %19, %21 : vector<32x128xf32>
      %c0_19 = arith.constant 0 : index
      %c0_20 = arith.constant 0 : index
      %23 = vector.load %arg9[%c0_19, %c0_20] : memref<32x128xf32, #tpu.memory_space<vmem>>, vector<32x128xf32>
      tpu.vector_store %arg9[%c0_19, %c0_20], %22 {strides = array<i32>} : memref<32x128xf32, #tpu.memory_space<vmem>>, vector<32x128xf32>,
    } else {
    }
    %c0 = arith.constant 0 : index
    %c0_1 = arith.constant 0 : index
    %3 = vector.load %arg9[%c0, %c0_1] : memref<32x128xf32, #tpu.memory_space<vmem>>, vector<32x128xf32>
    %c0_2 = arith.constant 0 : index
    %c0_3 = arith.constant 0 : index
    %4 = vector.load %arg6[%c0_2, %c0_3] : memref<128x128xf32, #tpu.memory_space<vmem>>, vector<128x128xf32>
    %cst = arith.constant dense<0.000000e+00> : vector<32x128xf32>
    %5 = tpu.matmul %3, %4, %cst {dimension_numbers = #tpu.dot_dimension_numbers<[1], [0], [0], [1], [0, 0, 1, 1], [], []>} : vector<32x128xf32>, vector<128x128xf32>, vector<32x128xf32> -> vector<32x128xf32>
    %c0_4 = arith.constant 0 : index
    %c0_5 = arith.constant 0 : index
    %6 = vector.load %arg7[%c0_4, %c0_5] : memref<1x128xf32, #tpu.memory_space<vmem>>, vector<1x128xf32>
    %7 = vector.broadcast %6 : vector<1x128xf32> to vector<32x128xf32>
    %8 = arith.addf %5, %7 : vector<32x128xf32>
    %cst_6 = arith.constant 0.000000e+00 : f32
    %9 = vector.broadcast %cst_6 : f32 to vector<32x128xf32>
    %10 = arith.maximumf %8, %9 : vector<32x128xf32>
    %c0_7 = arith.constant 0 : index
    %c0_8 = arith.constant 0 : index
    %11 = vector.load %arg8[%c0_7, %c0_8] : memref<32x128xf32, #tpu.memory_space<vmem>>, vector<32x128xf32>
    tpu.vector_store %arg8[%c0_7, %c0_8], %10 {strides = array<i32>} : memref<32x128xf32, #tpu.memory_space<vmem>>, vector<32x128xf32>,
    return
  }
  func.func @transform_0(%arg0: i32, %arg1: i32) -> (i32, i32) {
    %c0_i32 = arith.constant 0 : i32
    %c0_i32_0 = arith.constant 0 : i32
    return %arg0, %c0_i32 : i32, i32
  }
  func.func @transform_1(%arg0: i32, %arg1: i32) -> (i32, i32) {
    %c0_i32 = arith.constant 0 : i32
    %c0_i32_0 = arith.constant 0 : i32
    return %arg0, %c0_i32 : i32, i32
  }
  func.func @transform_2(%arg0: i32, %arg1: i32) -> (i32, i32) {
    %c0_i32 = arith.constant 0 : i32
    %c0_i32_0 = arith.constant 0 : i32
    %c0_i32_1 = arith.constant 0 : i32
    return %c0_i32, %c0_i32_0 : i32, i32
  }
  func.func @transform_3(%arg0: i32, %arg1: i32) -> (i32, i32) {
    %c0_i32 = arith.constant 0 : i32
    %c0_i32_0 = arith.constant 0 : i32
    %c0_i32_1 = arith.constant 0 : i32
    return %c0_i32, %c0_i32_0 : i32, i32
  }
  func.func @transform_4(%arg0: i32, %arg1: i32) -> (i32, i32) {
    %c0_i32 = arith.constant 0 : i32
    %c0_i32_0 = arith.constant 0 : i32
    return %c0_i32, %arg1 : i32, i32
  }
  func.func @transform_5(%arg0: i32, %arg1: i32) -> (i32, i32) {
    %c0_i32 = arith.constant 0 : i32
    %c0_i32_0 = arith.constant 0 : i32
    return %c0_i32, %arg1 : i32, i32
  }
  func.func @transform_6(%arg0: i32, %arg1: i32) -> (i32, i32) {
    %c0_i32 = arith.constant 0 : i32
    return %arg0, %arg1 : i32, i32
  }
}

</mosaic_0001>

<bundles_post_ra>
// kernel: tpu_custom_call.1
= control target key start
LH: loop header
LB: loop body
LE: loop exit
PB: predicated region body
PF: predicated region fallthrough
CT: control target
= control target key end

     0   :  { %11 = vsyncpa [#allocation4], 0  ;;  %s1188_s0 = inlined_call_operand.vmem [shape: f32[64,16], index: 0, kind: input, shape index: {}]   ;;  %s1189_s1 = inlined_call_operand.vmem [shape: f32[64,16], index: 1, kind: input, shape index: {}]   ;;  %s1190_s2 = inlined_call_operand.vmem [shape: f32[32,128], index: 2, kind: input, shape index: {}]   ;;  %s1191_s3 = inlined_call_operand.vmem [shape: f32[1,128], index: 3, kind: input, shape index: {}]   ;;  %s1192_s4 = inlined_call_operand.vmem [shape: f32[128,128], index: 4, kind: input, shape index: {}]   ;;  %s1193_s5 = inlined_call_operand.vmem [shape: f32[1,128], index: 5, kind: input, shape index: {}]   ;;  %s1194_s6 = inlined_call_operand.hbm [shape: f32[64,128], index: 6, kind: output, shape index: {}]  }
   0x1   :  { %13 = vsyncpa [#allocation4 + $0x1], 0  ;;  %s999_s21 = smov 0   ;;  %s1001_s22 = smov 0  }
   0x2   :  { %s1003_s23 = smov 0   ;;  %s1005_s24 = smov 0  }
   0x3   :  { %s1007_s25 = smov 0   ;;  %s1009_s26 = smov 0  }
   0x4 LB: > { %s720_s27 = sadd.s32 4294967295, %s958_s26   ;;  %s721_s28 = sadd.s32 4294967294, %s958_s26   ;;  %s958_s26 = sphi %s1009_s26, %s19_s26   ;;  %s954_s25 = sphi %s1007_s25, %s1201_s25   ;;  %s950_s24 = sphi %s1005_s24, %s1200_s24   ;;  %s946_s23 = sphi %s1003_s23, %s1199_s23   ;;  %s942_s22 = sphi %s1001_s22, %s1198_s22   ;;  %s938_s21 = sphi %s999_s21, %s1197_s21  }
   0x5   : > { %s31_s29 = sadd.s32 1, %s954_s25  ;;  %s186_s30 = sadd.s32 1, %s946_s23 }
   0x6   : > { %p33_p0 = scmp.ge.s32.totalorder %s31_s29, 2  ;;  %p196_p1 = scmp.ne.s32.totalorder %s946_s23, %s942_s22 }
   0x7   : > { %p197_p2 = scmp.eq.s32.totalorder %s720_s27, 1  ;;  %p202_p3 = scmp.ne.s32.totalorder %s942_s22, %s938_s21 }
   0x8   : > { %s1203_s29 = smov (%p33_p0, %s31_s29), 0  ;;  %p203_p5 = scmp.eq.s32.totalorder %s721_s28, 1 }
   0x9   : > { %p1039_p4 = por %p197_p2, %p196_p1  ;;  %s181_s8 = ssub.s32 %s954_s25, %s1203_s29 }
   0xa   : > { %p726_p6 = scmp.ge.s32.totalorder %s958_s26, 1  ;;  %p184_p7 = scmp.eq.s32.totalorder %s181_s8, 0 }
   0xb   : > { %p1046_p8 = por %p203_p5, %p202_p3  ;;  %p258_p9 = scmp.lt.s32.totalorder %s958_s26, 3 }
   0xc   : > { %s1052_s10 = scalar_select %p184_p7, %s946_s23, %s186_s30  }
   0xd   : > { %p259_p10 = pnand %p726_p6, %p258_p9 }
   0xe   : > { %s728_s11 = sshll.u32 (!%p259_p10), %s950_s24, 2  ;;  %s960_s17 = smov (!%p259_p10), 16  }
   0xf   : > { %262 = sbr.rel (%p259_p10) target bundleno = 564 (0x234), region = 44  ;;  %p301_p11 = scmp.lt.s32.totalorder (!%p259_p10), %s728_s11, 7 }
  0x10   : > { %s297_s30 = sand.u32 (!%p259_p10), 1, %s942_s22   ;;  %s743_s15 = sshll.u32 (!%p259_p10), %s950_s24, 9 }
  0x11   : > { %s1141_s18 = scalar_lea.hbm (!%p259_p10), %s1194_s6, %s743_s15  ;;  %s1143_s19 = scalar_lea.sflag (!%p259_p10), [#allocation4], %s297_s30 }
  0x12   : > { %s961_s20 = smov (!%p259_p10), [#allocation3]  }
  0x13   : > { %s886_s27 = sshll.u32 (!%p259_p10), %s961_s20, 4  ;;  %s887_s27 = int_to_ptr.vmem [resolvable:$false] %s886_s27 }
  0x14   : > { %v356_v0 = vld [vmem:[%s1190_s2 + $0x18] sm:$0xff]  ;;  %v355_v1 = vld [vmem:[%s1190_s2 + $0x10] sm:$0xff]  ;;  %v354_v2 = vld [vmem:[%s1190_s2 + $0x8] sm:$0xff]  ;;  %s1205_s11 = smov (!%p301_p11, %s728_s11), 7  ;;  %vm348_vm0 = vcmask 130048   ;;  %vm364_vm1 = vcmask 261120  }
  0x15   : > { %772 = vmatprep.subr.mxu0 %v356_v0  ;;  %v353_v3 = vld [vmem:[%s1190_s2] sm:$0xff]  ;;  %v493_v4 = vld [vmem:[%s1192_s4 + $0x78] sm:$0xff]  ;;  %v492_v5 = vld [vmem:[%s1192_s4 + $0x70] sm:$0xff]  ;;  %s729_s8 = sshll.u32 %s1205_s11, 3  ;;  %s888_s28 = scalar_lea.vmem %s887_s27, 1024 }
  0x16   : > { %773 = vmatpush3.msra.mxu0 %v356_v0  ;;  %786 = vmatprep.subr.mxu1 %v493_v4  ;;  %s310_s14 = scalar_lea.vmem %s1189_s1, %s729_s8  ;;  %v491_v8 = vld [vmem:[%s1192_s4 + $0x68] sm:$0xff]  ;;  %v490_v11 = vld [vmem:[%s1192_s4 + $0x60] sm:$0xff]  ;;  %v489_v12 = vld [vmem:[%s1192_s4 + $0x58] sm:$0xff]  ;;  %s304_s12 = scalar_lea.vmem %s1188_s0, %s729_s8 }
  0x17   : > { %774 = vmatprep.subr.mxu0 %v355_v1  ;;  %787 = vmatpush3.msra.mxu1 %v493_v4  ;;  %v328_v6 = vld [vmem:[%s310_s14] sm:$0xff]  ;;  %v330_v7 = vld [vmem:[%s310_s14 + $0x10] sm:$0xff]  ;;  %v329_v9 = vld [vmem:[%s310_s14 + $0x8] sm:$0xff]  ;;  %s727_s8 = sshll.u32 %s297_s30, 5 }
  0x18   : > { %775 = vmatpush3.msra.mxu0 %v355_v1  ;;  %788 = vmatprep.subr.mxu1 %v492_v5  ;;  %v331_v10 = vld [vmem:[%s310_s14 + $0x18] sm:$0xff]  ;;  %v488_v13 = vld [vmem:[%s1192_s4 + $0x50] sm:$0xff]  ;;  %v487_v14 = vld [vmem:[%s1192_s4 + $0x48] sm:$0xff]  ;;  %s299_s13 = scalar_lea.vmem [#allocation3], %s727_s8 }
  0x19   : > { %776 = vmatprep.subr.mxu0 %v354_v2  ;;  %336 = vrot.lane.b32.xlu0 %v328_v6, %s960_s17  ;;  %v486_v15 = vld [vmem:[%s1192_s4 + $0x40] sm:$0xff]  ;;  %v485_v16 = vld [vmem:[%s1192_s4 + $0x38] sm:$0xff]  ;;  %v484_v17 = vld [vmem:[%s1192_s4 + $0x30] sm:$0xff]  ;;  %s609_s14 = sshll.u32 %s299_s13, 4  ;;  %s1136_s14 = int_to_ptr.vmem [resolvable:$true] %s609_s14 }
  0x1a   : > { %777 = vmatpush3.msra.mxu0 %v354_v2  ;;  %340 = vrot.lane.b32.xlu1 %v330_v7, %s960_s17  ;;  %v483_v18 = vld [vmem:[%s1192_s4 + $0x28] sm:$0xff]  ;;  %v324_v19 = vld [vmem:[%s304_s12] sm:$0xff]  ;;  %v326_v23 = vld [vmem:[%s304_s12 + $0x10] sm:$0xff]  ;;  %s882_s24 = scalar_lea.vmem %s1136_s14, 512  ;;  %p889_p1 = scmp.lt.s32.totalorder %s1136_s14, %s887_s27 }
  0x1b   : > { %778 = vmatprep.subr.mxu0 %v353_v3  ;;  %789 = vmatpush3.msra.mxu1 %v492_v5  ;;  %v325_v24 = vld [vmem:[%s304_s12 + $0x8] sm:$0xff]  ;;  %v327_v28 = vld [vmem:[%s304_s12 + $0x18] sm:$0xff]  ;;  %v482_v31 = vld [vmem:[%s1192_s4 + $0x20] sm:$0xff]  ;;  %p883_p12 = scmp.ne.s32.totalorder %s1136_s14, %s882_s24  ;;  %p890_p2 = scmp.lt.s32.totalorder %s888_s28, %s882_s24 }
  0x1c   : > { %779 = vmatpush3.msra.mxu0 %v353_v3  ;;  %790 = vmatprep.subr.mxu1 %v491_v8  ;;  %v481_v32 = vld [vmem:[%s1192_s4 + $0x18] sm:$0xff]  ;;  %v480_v33 = vld [vmem:[%s1192_s4 + $0x10] sm:$0xff]  ;;  %v479_v34 = vld [vmem:[%s1192_s4 + $0x8] sm:$0xff] }
  0x1d   : > { %791 = vmatpush3.msra.mxu1 %v491_v8  ;;  %338 = vrot.lane.b32.xlu0 %v329_v9, %s960_s17  ;;  %v478_v35 = vld [vmem:[%s1192_s4] sm:$0xff]  ;;  %p884_p13 = pnand %p883_p12, %p1039_p4  ;;  %p891_p3 = por %p890_p2, %p889_p1 }
  0x1e   : > { %342 = vrot.lane.b32.xlu1 %v331_v10, %s960_s17  ;;  %792 = vmatprep.subr.mxu1 %v490_v11  ;;  %v732_v36 = vld [vmem:[%s1191_s3] ss:$0 sm:$0xff] }
  0x1f   : > { %793 = vmatpush3.msra.mxu1 %v490_v11  ;;  %v737_v53 = vld [vmem:[%s1193_s5] ss:$0 sm:$0xff]  ;;  %p885_p0 = pneg %p884_p13 }
  0x20   : > { %794 = vmatprep.subr.mxu1 %v489_v12 }
  0x21   : > { %795 = vmatpush3.msra.mxu1 %v489_v12  ;;  %p892_p5 = pnand %p891_p3, %p885_p0 }
  0x22   : > { %796 = vmatprep.subr.mxu1 %v488_v13 }
  0x23   : > { %797 = vmatpush3.msra.mxu1 %v488_v13 }
  0x24   : > { %798 = vmatprep.subr.mxu1 %v487_v14 }
  0x25   : > { %799 = vmatpush3.msra.mxu1 %v487_v14 }
  0x26   : > { %800 = vmatprep.subr.mxu1 %v486_v15 }
  0x27   : > { %801 = vmatpush3.msra.mxu1 %v486_v15 }
  0x28   : > { %802 = vmatprep.subr.mxu1 %v485_v16 }
  0x29   : > { %803 = vmatpush3.msra.mxu1 %v485_v16 }
  0x2a   : > { %804 = vmatprep.subr.mxu1 %v484_v17 }
  0x2b   : > { %805 = vmatpush3.msra.mxu1 %v484_v17 }
  0x2c   : > { %806 = vmatprep.subr.mxu1 %v483_v18 }
  0x2d   : > { %807 = vmatpush3.msra.mxu1 %v483_v18 }
  0x2e   : > { %808 = vmatprep.subr.mxu1 %v482_v31 }
  0x2f   : > { %809 = vmatpush3.msra.mxu1 %v482_v31 }
  0x30   : > { %810 = vmatprep.subr.mxu1 %v481_v32 }
  0x31   : > { %811 = vmatpush3.msra.mxu1 %v481_v32 }
  0x32   : > { %812 = vmatprep.subr.mxu1 %v480_v33 }
  0x33   : > { %813 = vmatpush3.msra.mxu1 %v480_v33 }
  0x34   : > { %814 = vmatprep.subr.mxu1 %v479_v34 }
  0x35   : > { %815 = vmatpush3.msra.mxu1 %v479_v34 }
  0x36   : > { %816 = vmatprep.subr.mxu1 %v478_v35 }
  0x37   : > { %817 = vmatpush3.msra.mxu1 %v478_v35 }
  0x8b   : > { %v337_v20 = vpop.permute.xlu0 %336 }
  0x8c   : > { %v341_v21 = vpop.permute.xlu1 %340  ;;  %v349_v22 = vsel %vm348_vm0, %v324_v19, %v337_v20 }
  0x8d   : > { %780 = vmatprep.mubr.msk.f32.mxu0 %vm364_vm1, %v349_v22  ;;  %v351_v25 = vsel %vm348_vm0, %v326_v23, %v341_v21 }
  0x8f   : > { %v339_v26 = vpop.permute.xlu0 %338 }
  0x90   : > { %v343_v27 = vpop.permute.xlu1 %342  ;;  %v350_v29 = vsel %vm348_vm0, %v325_v24, %v339_v26 }
  0x91   : > { %781 = vmatmul.mubr.msk.f32.vlgmr.msra.gmra.mxu0 %vm364_vm1, %v350_v29  ;;  %v352_v30 = vsel %vm348_vm0, %v327_v28, %v343_v27 }
  0x92   : > { %783 = vmatprep.mubr.msk.f32.mxu0 %vm364_vm1, %v351_v25 }
  0x95   : > { %784 = vmatmul.mubr.msk.f32.gmra.mxu0 %vm364_vm1, %v352_v30 }
 0x151   : > { %v782_v37 = vpop.f32.mrf.mxu0 }
 0x152   : > { %v449_v38 = vadd.f32 %v782_v37, %v732_v36 }
 0x153   : > { %v443_v39 = vpop.f32.mrf.mxu0 }
 0x154   : > { %v444_v40 = vadd.f32 %v732_v36, %v443_v39  ;;  %v463_v41 = vmul.f32 0.2, %v449_v38 }
 0x155   : > { %v785_v42 = vpop.f32.mrf.mxu0 }
 0x156   : > { %v459_v43 = vadd.f32 %v785_v42, %v732_v36  ;;  %v462_v44 = vmul.f32 0.2, %v444_v40  ;;  %v467_v48 = vmax.f32 %v449_v38, %v463_v41 }
 0x157   : > { %v453_v45 = vpop.f32.mrf.mxu0 }
 0x158   : > { %v454_v46 = vadd.f32 %v732_v36, %v453_v45  ;;  %v466_v47 = vmax.f32 %v444_v40, %v462_v44  ;;  %v465_v49 = vmul.f32 0.2, %v459_v43 }
 0x15a   : > { %v464_v50 = vmul.f32 0.2, %v454_v46  ;;  %818 = vmatprep.mubr.f32.mxu1 %v466_v47  ;;  %v469_v52 = vmax.f32 %v459_v43, %v465_v49 }
 0x15b   : > { %819 = vmatmul.mubr.f32.vlgmr.msra.gmra.mxu1 %v467_v48 }
 0x15c   : > { %v468_v51 = vmax.f32 %v454_v46, %v464_v50 }
 0x15e   : > { %821 = vmatprep.mubr.f32.mxu1 %v468_v51 }
 0x15f   : > { %822 = vmatmul.mubr.f32.gmra.mxu1 %v469_v52 }
 0x21b   : > { %v820_v54 = vpop.f32.mrf.mxu1 }
 0x21c   : > { %v573_v55 = vadd.f32 %v820_v54, %v737_v53 }
 0x21d   : > { %v567_v56 = vpop.f32.mrf.mxu1 }
 0x21e   : > { %v587_v57 = vmax.f32 %v573_v55, 0.0  ;;  %v568_v58 = vadd.f32 %v737_v53, %v567_v56 }
 0x21f   : > { %v823_v59 = vpop.f32.mrf.mxu1 }
 0x220   : > { %591 = vst [vmem:[%s299_s13 + $0x8] sm:$0xff] %v587_v57  ;;  %v586_v60 = vmax.f32 %v568_v58, 0.0  ;;  %v583_v61 = vadd.f32 %v823_v59, %v737_v53 }
 0x221   : > { %v577_v62 = vpop.f32.mrf.mxu1 }
 0x222   : > { %590 = vst [vmem:[%s299_s13] sm:$0xff] %v586_v60  ;;  %v589_v63 = vmax.f32 %v583_v61, 0.0  ;;  %v578_v0 = vadd.f32 %v737_v53, %v577_v62 }
 0x224   : > { %593 = vst [vmem:[%s299_s13 + $0x18] sm:$0xff] %v589_v63  ;;  %v588_v1 = vmax.f32 %v578_v0, 0.0 }
 0x226   : > { %592 = vst [vmem:[%s299_s13 + $0x10] sm:$0xff] %v588_v1 }
 0x227   : > { %895 = shalt.err (!%p892_p5)
}
 0x228   : > { %s896_s30 = scalar_lea.hbm %s1141_s18, 512  ;;  %s900_s8 = scalar_lea.hbm %s1194_s6, 1024 }
 0x229   : > { %p897_p6 = scmp.ne.s32.totalorder %s1141_s18, %s896_s30  ;;  %p901_p10 = scmp.lt.s32.totalorder %s1141_s18, %s1194_s6 }
 0x22a   : > { %p902_p11 = scmp.lt.s32.totalorder %s900_s8, %s896_s30 }
 0x22b   : > { %p898_p7 = pnand %p897_p6, %p1039_p4 }
 0x22c   : > { %p903_p12 = por %p902_p11, %p901_p10 }
 0x22d   : > { %p899_p9 = pneg %p898_p7 }
 0x22f   : > { %p904_p13 = pnand %p903_p12, %p899_p9 }
 0x231   : > { %907 = shalt.err (!%p904_p13)
}
 0x232   : > { %s962_s16 = smov 128   ;;  %s963_s17 = smov 8  }
 0x233   : > { %824 = dma.vmem_to_hbm [thread:$0]  (%p1039_p4), %s1136_s14, 512, %s1141_s18, %s1143_s19, %s962_s16, %s962_s16, %s963_s17  }
 0x234 PF: > { %p830_p0 = scmp.ge.s32.totalorder %s958_s26, 2  ;;  %s624_s24 = sand.u32 1, %s938_s21  }
 0x235   : > { %s625_s20 = scalar_lea.sflag [#allocation4], %s624_s24 }
 0x236   : > { %p827_p1 = pnand %p830_p0, %p1046_p8 }
 0x238   : > { %p828_p2 = pneg %p827_p1 }
 0x23a   : > { %933 = dma.done.wait (%p828_p2), %s625_s20, 512  }
 0x23b   : > { %935 = vsyncadd (%p828_p2), %s625_s20, 4294966784  ;;  %s19_s26 = sadd.s32 1, %s958_s26   ;;  %s1197_s21 = smov %s942_s22 }
 0x23c   : > { %p16_p3 = scmp.ge.s32.totalorder %s19_s26, 4   ;;  %s1198_s22 = smov %s946_s23 }
 0x23d   : > { %s1199_s23 = smov %s1052_s10  ;;  %s1200_s24 = smov %s954_s25 }
 0x23e   : > { %s1201_s25 = smov %s1203_s29  ;;  %18 = sbr.rel (!%p16_p3) target bundleno = 4 (0x4), region = 92 }
 0x243   :  { %630 = vsyncpa [#allocation4], 1 }
 0x244   :  { %632 = vsyncpa [#allocation4 + $0x1], 1 }

</bundles_post_ra>
